<compile_context>
chip_gen: v7x
topology: tpu7x:2x2x1
jax: 0.10.0
libtpu: 0.0.40
codegen_flags: <defaults>
</compile_context>

<pallas_src>
import functools
import math

import jax
import jax.numpy as jnp
from jax.experimental import pallas as pl
from jax.experimental.pallas import tpu as pltpu

EPS = 1e-5
NEG_SLOPE = 0.2
LANE = 128
MAX_M_TILE = 512                 # output-pixel rows per grid step (v6e can raise)
VMEM_LIMIT = 32 * 1024 * 1024    # <= v7x scoped budget, above v5e's 16 MiB default


def _round_up(x, m):
    return ((x + m - 1) // m) * m


# ---------------------------------------------------------------------------
# Fused path (layer fits in one M tile): conv matmul + BN(train) + LeakyReLU
# in a single kernel -> one launch, no HBM intermediate.
# ---------------------------------------------------------------------------
def _fused_kernel(p_ref, w_ref, gb_ref, o_ref, *, m_real, m_pad):
    # p_ref: (Mp, Kd) bf16   w_ref: (Kd, Co) bf16   gb_ref: (2, Co) f32
    # o_ref: (Mp, Co) out_dtype
    y = jnp.dot(p_ref[...], w_ref[...], preferred_element_type=jnp.float32)
    # Padded patch rows are exactly zero, so sum(y) only sees the real rows;
    # their spurious (0 - mean)^2 contribution is compensated exactly below
    # (two-pass variance, addresses the single-pass precision concern).
    mean = jnp.sum(y, axis=0, keepdims=True) * (1.0 / m_real)
    d2 = jnp.sum((y - mean) * (y - mean), axis=0, keepdims=True)
    var = (d2 - (m_pad - m_real) * mean * mean) * (1.0 / m_real)
    inv = jax.lax.rsqrt(jnp.maximum(var, 0.0) + EPS)        # EUP, free filler
    scale = gb_ref[0:1, :] * inv                            # gamma * inv_std
    shift = gb_ref[1:2, :] - mean * scale                   # beta - mean*scale
    z = y * scale + shift
    o_ref[...] = jnp.where(z > 0, z, NEG_SLOPE * z).astype(o_ref.dtype)


def fused_conv_bn_lrelu(patches, w_mat, gamma_beta, m_real, out_dtype):
    mp, kd = patches.shape
    co = w_mat.shape[1]
    kernel = functools.partial(_fused_kernel, m_real=m_real, m_pad=mp)
    return pl.pallas_call(
        kernel,
        out_shape=jax.ShapeDtypeStruct((mp, co), out_dtype),
        grid=(1,),
        in_specs=[
            pl.BlockSpec((mp, kd), lambda i: (0, 0)),
            pl.BlockSpec((kd, co), lambda i: (0, 0)),
            pl.BlockSpec((2, co), lambda i: (0, 0)),
        ],
        out_specs=pl.BlockSpec((mp, co), lambda i: (0, 0)),
        compiler_params=pltpu.CompilerParams(
            dimension_semantics=("arbitrary",),
            vmem_limit_bytes=VMEM_LIMIT),
    )(patches, w_mat, gamma_beta)


# ---------------------------------------------------------------------------
# Tiled path, pass 1: MXU matmul + per-tile BN partial sums (y stored bf16).
# ---------------------------------------------------------------------------
def _matmul_stats_kernel(p_ref, w_ref, y_ref, s_ref):
    # p_ref: (tm, Kd) bf16   w_ref: (Kd, Co) bf16
    # y_ref: (tm, Co) bf16   s_ref: (1, 8, Co) f32
    #   sublane rows 0/1 hold [sum ; sum of squares]; rows 2..7 are zero
    #   padding so the stats store is a full, unmasked 8-sublane vst.
    y = jnp.dot(p_ref[...], w_ref[...], preferred_element_type=jnp.float32)
    y_ref[...] = y.astype(y_ref.dtype)
    s1 = jnp.sum(y, axis=0, keepdims=True)
    s2 = jnp.sum(y * y, axis=0, keepdims=True)
    zero = jnp.zeros((6, s1.shape[1]), jnp.float32)
    s_ref[...] = jnp.concatenate([s1, s2, zero], axis=0)[None]


def matmul_stats(patches, w_mat, tm):
    mp, kd = patches.shape
    co = w_mat.shape[1]
    n_m = mp // tm
    return pl.pallas_call(
        _matmul_stats_kernel,
        out_shape=(jax.ShapeDtypeStruct((mp, co), jnp.bfloat16),
                   jax.ShapeDtypeStruct((n_m, 8, co), jnp.float32)),
        grid=(n_m,),
        in_specs=[
            pl.BlockSpec((tm, kd), lambda i: (i, 0)),
            # Grid-invariant weight (constant index_map) stays VMEM-resident.
            pl.BlockSpec((kd, co), lambda i: (0, 0)),
        ],
        out_specs=(
            pl.BlockSpec((tm, co), lambda i: (i, 0)),
            pl.BlockSpec((1, 8, co), lambda i: (i, 0, 0)),
        ),
        compiler_params=pltpu.CompilerParams(
            dimension_semantics=("parallel",),
            vmem_limit_bytes=VMEM_LIMIT),
    )(patches, w_mat)


# ---------------------------------------------------------------------------
# Tiled path, pass 2: in-kernel BN-stat fold + normalize + LeakyReLU(0.2).
# ---------------------------------------------------------------------------
def _bn_lrelu_kernel(y_ref, part_ref, gb_ref, o_ref, *, m_real):
    # y_ref: (tm, Co) bf16   part_ref: (n_m, 8, Co) f32   gb_ref: (2, Co) f32
    # The stat reduction + rsqrt + gamma/beta fold is recomputed per tile: it
    # is tiny (free filler in a store-bound kernel) and stays correct when
    # the "parallel" grid is sharded across v7x's two TensorCores.
    s = jnp.sum(part_ref[...], axis=0)                       # (8, Co)
    mean = s[0:1, :] * (1.0 / m_real)
    var = jnp.maximum(s[1:2, :] * (1.0 / m_real) - mean * mean, 0.0)
    inv = jax.lax.rsqrt(var + EPS)
    scale = gb_ref[0:1, :] * inv
    shift = gb_ref[1:2, :] - mean * scale
    z = y_ref[...].astype(jnp.float32) * scale + shift
    o_ref[...] = jnp.where(z > 0, z, NEG_SLOPE * z).astype(o_ref.dtype)


def bn_lrelu_apply(y, partials, gamma_beta, tm, m_real, out_dtype):
    mp, co = y.shape
    n_m = mp // tm
    kernel = functools.partial(_bn_lrelu_kernel, m_real=m_real)
    return pl.pallas_call(
        kernel,
        out_shape=jax.ShapeDtypeStruct((mp, co), out_dtype),
        grid=(n_m,),
        in_specs=[
            pl.BlockSpec((tm, co), lambda i: (i, 0)),
            pl.BlockSpec((n_m, 8, co), lambda i: (0, 0, 0)),
            pl.BlockSpec((2, co), lambda i: (0, 0)),
        ],
        out_specs=pl.BlockSpec((tm, co), lambda i: (i, 0)),
        compiler_params=pltpu.CompilerParams(
            dimension_semantics=("parallel",),
            vmem_limit_bytes=VMEM_LIMIT),
    )(y, partials, gamma_beta)


# ---------------------------------------------------------------------------
# Host-side glue: im2col, lane padding, weight reshaping, layer dispatch.
# ---------------------------------------------------------------------------
def _im2col(x_nhwc, K, stride):
    """Extract (kh, kw, cin)-ordered patches.  Returns (M, K*K*Cin), dims."""
    N, H, W, C = x_nhwc.shape
    Ho = (H - K) // stride + 1
    Wo = (W - K) // stride + 1
    cols = []
    for kh in range(K):
        for kw in range(K):
            cols.append(
                x_nhwc[:, kh:kh + stride * (Ho - 1) + 1:stride,
                          kw:kw + stride * (Wo - 1) + 1:stride, :])
    p = jnp.stack(cols, axis=3)                        # (N, Ho, Wo, K*K, C)
    return p.reshape(N * Ho * Wo, K * K * C), (N, Ho, Wo)


def conv_bn_lrelu_layer(x_nhwc, cin_real, w_oihw, gamma, beta, K, stride,
                        out_dtype):
    """Conv2d(K, stride, pad=0, no bias) + BatchNorm2d(train) + LeakyReLU(0.2).

    `x_nhwc` may carry zero-padded channels from the previous layer's lane
    padding; only the first `cin_real` are used — the slice fuses into the
    im2col gather under jit (no standalone inter-layer relayout).  Returns
    NHWC activation with Cout zero-padded to a multiple of 128, plus the real
    channel count.
    """
    N, H, W, _ = x_nhwc.shape
    Cout = w_oihw.shape[0]

    # Lane-dense padding: Cin so that K*K*cin_pad % 128 == 0, Cout up to 128.
    cin_pad = _round_up(cin_real, LANE // math.gcd(K * K, LANE))
    cout_pad = _round_up(Cout, LANE)

    x_p = x_nhwc[..., :cin_real]
    if cin_pad > cin_real:
        x_p = jnp.pad(x_p, ((0, 0), (0, 0), (0, 0), (0, cin_pad - cin_real)))
    x_p = x_p.astype(jnp.bfloat16)

    # TODO(synk): fuse the patch build into the kernel (tap accumulation or
    # strided DMA) instead of materializing the im2col matrix in HBM.
    patches, (N, Ho, Wo) = _im2col(x_p, K, stride)     # (M, K*K*cin_pad)
    M = N * Ho * Wo

    # Weight (Cout,Cin,kh,kw) -> (kh,kw,cin_pad,cout_pad) -> (Kd, Co), bf16.
    w = jnp.transpose(w_oihw, (2, 3, 1, 0))
    w = jnp.pad(w, ((0, 0), (0, 0), (0, cin_pad - cin_real),
                    (0, cout_pad - Cout)))
    w_mat = w.reshape(K * K * cin_pad, cout_pad).astype(jnp.bfloat16)

    # gamma is ZERO-padded so padded Cout lanes are exactly zero no matter
    # what their (zero) conv output / BN stats are.
    gb = jnp.stack([jnp.pad(gamma, (0, cout_pad - Cout)),
                    jnp.pad(beta, (0, cout_pad - Cout))]).astype(jnp.float32)

    if M <= MAX_M_TILE:
        # Whole layer in one tile: fully fused single launch.
        Mp = _round_up(M, 16)                          # bf16 sublane packing
        if Mp > M:
            patches = jnp.pad(patches, ((0, Mp - M), (0, 0)))
        out = fused_conv_bn_lrelu(patches, w_mat, gb, M, out_dtype)
    else:
        # >= 2 "parallel" M tiles (shards across v7x's two TensorCores).
        n_m = -(-M // MAX_M_TILE)
        tm = _round_up(-(-M // n_m), 16)
        Mp = tm * n_m
        if Mp > M:
            patches = jnp.pad(patches, ((0, Mp - M), (0, 0)))
        y, partials = matmul_stats(patches, w_mat, tm)          # y is bf16
        out = bn_lrelu_apply(y, partials, gb, tm, M, out_dtype)

    return out[:M].reshape(N, Ho, Wo, cout_pad), Cout


def init_params(key, layer_defs):
    """layer_defs: ((Cin, Cout, K, stride), ...).  Synthetic deterministic init.

    Conv bias is omitted: it is cancelled exactly by the training-mode
    BatchNorm mean subtraction (mathematical no-op).
    """
    params = []
    for (cin, cout, k, _s) in layer_defs:
        key, kw, kg, kb = jax.random.split(key, 4)
        w = 0.05 * jax.random.normal(kw, (cout, cin, k, k), jnp.float32)
        gamma = 1.0 + 0.1 * jax.random.normal(kg, (cout,), jnp.float32)
        beta = 0.1 * jax.random.normal(kb, (cout,), jnp.float32)
        params.append((w, gamma, beta))
    return tuple(params)


@functools.partial(jax.jit, static_argnums=(2,))
def patch_discriminator_forward(x_nchw, params, layer_defs):
    # PyTorch NCHW at the boundary; compute in NHWC (channels on lanes).
    x = jnp.transpose(x_nchw, (0, 2, 3, 1)).astype(jnp.float32)
    real_c = x.shape[-1]
    n_layers = len(layer_defs)
    for li, ((w, g, b), (_cin, _cout, k, stride)) in enumerate(
            zip(params, layer_defs)):
        last = li == n_layers - 1
        out_dtype = jnp.float32 if last else jnp.bfloat16
        x, real_c = conv_bn_lrelu_layer(x, real_c, w, g, b, k, stride,
                                        out_dtype)
    return jnp.transpose(x[..., :real_c], (0, 3, 1, 2))   # NCHW, like PyTorch


def _reference_forward(x_nchw, params, layer_defs):
    """Pure-JAX f32 reference: conv(no bias) + train-mode BN + LeakyReLU."""
    x = x_nchw.astype(jnp.float32)
    for (w, gamma, beta), (_cin, _cout, _k, stride) in zip(params, layer_defs):
        y = jax.lax.conv_general_dilated(
            x, w, window_strides=(stride, stride), padding='VALID',
            dimension_numbers=('NCHW', 'OIHW', 'NCHW'))
        mean = jnp.mean(y, axis=(0, 2, 3), keepdims=True)
        var = jnp.mean(jnp.square(y - mean), axis=(0, 2, 3), keepdims=True)
        y = (y - mean) * jax.lax.rsqrt(var + EPS)
        y = y * gamma[None, :, None, None] + beta[None, :, None, None]
        x = jnp.where(y > 0, y, NEG_SLOPE * y)
    return x


if __name__ == "__main__":
    key = jax.random.PRNGKey(0)
    kx, kx2, kp = jax.random.split(key, 3)

    # arch = 'I3,C4-64-2,C4-128-2'  (input_dim = 3 + layout_dim, layout_dim=0)
    layer_defs = ((3, 64, 4, 2), (64, 128, 4, 2))
    params = init_params(kp, layer_defs)

    # Small input (N=2, RGB, 16x16): both layers take the fused 1-tile path.
    x = jax.random.normal(kx, (2, 3, 16, 16), jnp.float32)
    out = jax.block_until_ready(
        patch_discriminator_forward(x, params, layer_defs))
    # Conv1: (16-4)//2+1 = 7 ; Conv2: (7-4)//2+1 = 2  -> (2, 128, 2, 2)
    assert out.shape == (2, 128, 2, 2), out.shape
    assert bool(jnp.all(jnp.isfinite(out)))
    ref = _reference_forward(x, params, layer_defs)
    assert float(jnp.max(jnp.abs(out - ref))) < 1e-1   # bf16 MXU tolerance

    # Larger input: layer 1 takes the tiled (>= 2 parallel steps) path.
    x2 = jax.random.normal(kx2, (2, 3, 64, 64), jnp.float32)
    out2 = jax.block_until_ready(
        patch_discriminator_forward(x2, params, layer_defs))
    assert out2.shape == (2, 128, 14, 14), out2.shape
    assert bool(jnp.all(jnp.isfinite(out2)))
    ref2 = _reference_forward(x2, params, layer_defs)
    assert float(jnp.max(jnp.abs(out2 - ref2))) < 1e-1

    print("KERNEL_OK")
</pallas_src>

<mosaic_0001>
module attributes {stable_mosaic.version = 11 : i64} {
  func.func @_fused_kernel(%arg0: i32, %arg1: memref<112x128xbf16, #tpu.memory_space<vmem>>, %arg2: memref<128x128xbf16, #tpu.memory_space<vmem>>, %arg3: memref<2x128xf32, #tpu.memory_space<vmem>>, %arg4: memref<112x128xbf16, #tpu.memory_space<vmem>>) attributes {dimension_semantics = [#tpu.dimension_semantics<arbitrary>], iteration_bounds = array<i64: 1>, scalar_prefetch = 0 : i64, scratch_operands = 0 : i64, tpu.core_type = #tpu.core_type<tc>, window_params = [{pipeline_mode = #tpu.pipeline_mode<synchronous>, transform_indices = @transform_0, window_bounds = array<i64: 112, 128>}, {pipeline_mode = #tpu.pipeline_mode<synchronous>, transform_indices = @transform_1, window_bounds = array<i64: 128, 128>}, {pipeline_mode = #tpu.pipeline_mode<synchronous>, transform_indices = @transform_2, window_bounds = array<i64: 2, 128>}, {pipeline_mode = #tpu.pipeline_mode<synchronous>, transform_indices = @transform_3, window_bounds = array<i64: 112, 128>}]} {
    %c0 = arith.constant 0 : index
    %c0_0 = arith.constant 0 : index
    %0 = vector.load %arg1[%c0, %c0_0] : memref<112x128xbf16, #tpu.memory_space<vmem>>, vector<112x128xbf16>
    %c0_1 = arith.constant 0 : index
    %c0_2 = arith.constant 0 : index
    %1 = vector.load %arg2[%c0_1, %c0_2] : memref<128x128xbf16, #tpu.memory_space<vmem>>, vector<128x128xbf16>
    %cst = arith.constant dense<0.000000e+00> : vector<112x128xf32>
    %2 = tpu.matmul %0, %1, %cst {dimension_numbers = #tpu.dot_dimension_numbers<[1], [0], [0], [1], [0, 0, 1, 1], [], []>} : vector<112x128xbf16>, vector<128x128xbf16>, vector<112x128xf32> -> vector<112x128xf32>
    %cst_3 = arith.constant dense<0.000000e+00> : vector<128xf32>
    %3 = vector.multi_reduction <add>, %2, %cst_3 [0] : vector<112x128xf32> to vector<128xf32>
    %4 = vector.shape_cast %3 : vector<128xf32> to vector<1x128xf32>
    %cst_4 = arith.constant 0.0102040814 : f32
    %5 = vector.broadcast %cst_4 : f32 to vector<1x128xf32>
    %6 = arith.mulf %4, %5 : vector<1x128xf32>
    %7 = vector.broadcast %6 : vector<1x128xf32> to vector<112x128xf32>
    %8 = arith.subf %2, %7 : vector<112x128xf32>
    %9 = vector.broadcast %6 : vector<1x128xf32> to vector<112x128xf32>
    %10 = arith.subf %2, %9 : vector<112x128xf32>
    %11 = arith.mulf %8, %10 : vector<112x128xf32>
    %cst_5 = arith.constant dense<0.000000e+00> : vector<128xf32>
    %12 = vector.multi_reduction <add>, %11, %cst_5 [0] : vector<112x128xf32> to vector<128xf32>
    %13 = vector.shape_cast %12 : vector<128xf32> to vector<1x128xf32>
    %cst_6 = arith.constant 1.400000e+01 : f32
    %14 = vector.broadcast %cst_6 : f32 to vector<1x128xf32>
    %15 = arith.mulf %14, %6 : vector<1x128xf32>
    %16 = arith.mulf %15, %6 : vector<1x128xf32>
    %17 = arith.subf %13, %16 : vector<1x128xf32>
    %cst_7 = arith.constant 0.0102040814 : f32
    %18 = vector.broadcast %cst_7 : f32 to vector<1x128xf32>
    %19 = arith.mulf %17, %18 : vector<1x128xf32>
    %cst_8 = arith.constant 0.000000e+00 : f32
    %20 = vector.broadcast %cst_8 : f32 to vector<1x128xf32>
    %21 = arith.maximumf %19, %20 : vector<1x128xf32>
    %cst_9 = arith.constant 9.99999974E-6 : f32
    %22 = vector.broadcast %cst_9 : f32 to vector<1x128xf32>
    %23 = arith.addf %21, %22 : vector<1x128xf32>
    %24 = math.rsqrt %23 : vector<1x128xf32>
    %c0_10 = arith.constant 0 : index
    %c0_11 = arith.constant 0 : index
    %25 = vector.load %arg3[%c0_10, %c0_11] : memref<2x128xf32, #tpu.memory_space<vmem>>, vector<1x128xf32>
    %26 = arith.mulf %25, %24 : vector<1x128xf32>
    %c1 = arith.constant 1 : index
    %c0_12 = arith.constant 0 : index
    %27 = vector.load %arg3[%c1, %c0_12] : memref<2x128xf32, #tpu.memory_space<vmem>>, vector<1x128xf32>
    %28 = arith.mulf %6, %26 : vector<1x128xf32>
    %29 = arith.subf %27, %28 : vector<1x128xf32>
    %30 = vector.broadcast %26 : vector<1x128xf32> to vector<112x128xf32>
    %31 = arith.mulf %2, %30 : vector<112x128xf32>
    %32 = vector.broadcast %29 : vector<1x128xf32> to vector<112x128xf32>
    %33 = arith.addf %31, %32 : vector<112x128xf32>
    %cst_13 = arith.constant 0.000000e+00 : f32
    %34 = vector.broadcast %cst_13 : f32 to vector<112x128xf32>
    %35 = arith.cmpf ogt, %33, %34 : vector<112x128xf32>
    %cst_14 = arith.constant 2.000000e-01 : f32
    %36 = vector.broadcast %cst_14 : f32 to vector<112x128xf32>
    %37 = arith.mulf %36, %33 : vector<112x128xf32>
    %38 = arith.select %35, %33, %37 : vector<112x128xi1>, vector<112x128xf32>
    %39 = arith.truncf %38 : vector<112x128xf32> to vector<112x128xbf16>
    %c0_15 = arith.constant 0 : index
    %c0_16 = arith.constant 0 : index
    %40 = vector.load %arg4[%c0_15, %c0_16] : memref<112x128xbf16, #tpu.memory_space<vmem>>, vector<112x128xbf16>
    tpu.vector_store %arg4[%c0_15, %c0_16], %39 {strides = array<i32>} : memref<112x128xbf16, #tpu.memory_space<vmem>>, vector<112x128xbf16>,
    return
  }
  func.func @transform_0(%arg0: i32) -> (i32, i32) {
    %c0_i32 = arith.constant 0 : i32
    %c0_i32_0 = arith.constant 0 : i32
    %c0_i32_1 = arith.constant 0 : i32
    return %c0_i32, %c0_i32_0 : i32, i32
  }
  func.func @transform_1(%arg0: i32) -> (i32, i32) {
    %c0_i32 = arith.constant 0 : i32
    %c0_i32_0 = arith.constant 0 : i32
    %c0_i32_1 = arith.constant 0 : i32
    return %c0_i32, %c0_i32_0 : i32, i32
  }
  func.func @transform_2(%arg0: i32) -> (i32, i32) {
    %c0_i32 = arith.constant 0 : i32
    %c0_i32_0 = arith.constant 0 : i32
    %c0_i32_1 = arith.constant 0 : i32
    return %c0_i32, %c0_i32_0 : i32, i32
  }
  func.func @transform_3(%arg0: i32) -> (i32, i32) {
    %c0_i32 = arith.constant 0 : i32
    %c0_i32_0 = arith.constant 0 : i32
    %c0_i32_1 = arith.constant 0 : i32
    return %c0_i32, %c0_i32_0 : i32, i32
  }
}

module attributes {stable_mosaic.version = 11 : i64} {
  func.func @_fused_kernel(%arg0: i32, %arg1: memref<16x1024xbf16, #tpu.memory_space<vmem>>, %arg2: memref<1024x128xbf16, #tpu.memory_space<vmem>>, %arg3: memref<2x128xf32, #tpu.memory_space<vmem>>, %arg4: memref<16x128xf32, #tpu.memory_space<vmem>>) attributes {dimension_semantics = [#tpu.dimension_semantics<arbitrary>], iteration_bounds = array<i64: 1>, scalar_prefetch = 0 : i64, scratch_operands = 0 : i64, tpu.core_type = #tpu.core_type<tc>, window_params = [{pipeline_mode = #tpu.pipeline_mode<synchronous>, transform_indices = @transform_0, window_bounds = array<i64: 16, 1024>}, {pipeline_mode = #tpu.pipeline_mode<synchronous>, transform_indices = @transform_1, window_bounds = array<i64: 1024, 128>}, {pipeline_mode = #tpu.pipeline_mode<synchronous>, transform_indices = @transform_2, window_bounds = array<i64: 2, 128>}, {pipeline_mode = #tpu.pipeline_mode<synchronous>, transform_indices = @transform_3, window_bounds = array<i64: 16, 128>}]} {
    %c0 = arith.constant 0 : index
    %c0_0 = arith.constant 0 : index
    %0 = vector.load %arg1[%c0, %c0_0] : memref<16x1024xbf16, #tpu.memory_space<vmem>>, vector<16x1024xbf16>
    %c0_1 = arith.constant 0 : index
    %c0_2 = arith.constant 0 : index
    %1 = vector.load %arg2[%c0_1, %c0_2] : memref<1024x128xbf16, #tpu.memory_space<vmem>>, vector<1024x128xbf16>
    %cst = arith.constant dense<0.000000e+00> : vector<16x128xf32>
    %2 = tpu.matmul %0, %1, %cst {dimension_numbers = #tpu.dot_dimension_numbers<[1], [0], [0], [1], [0, 0, 1, 1], [], []>} : vector<16x1024xbf16>, vector<1024x128xbf16>, vector<16x128xf32> -> vector<16x128xf32>
    %cst_3 = arith.constant dense<0.000000e+00> : vector<128xf32>
    %3 = vector.multi_reduction <add>, %2, %cst_3 [0] : vector<16x128xf32> to vector<128xf32>
    %4 = vector.shape_cast %3 : vector<128xf32> to vector<1x128xf32>
    %cst_4 = arith.constant 1.250000e-01 : f32
    %5 = vector.broadcast %cst_4 : f32 to vector<1x128xf32>
    %6 = arith.mulf %4, %5 : vector<1x128xf32>
    %7 = vector.broadcast %6 : vector<1x128xf32> to vector<16x128xf32>
    %8 = arith.subf %2, %7 : vector<16x128xf32>
    %9 = vector.broadcast %6 : vector<1x128xf32> to vector<16x128xf32>
    %10 = arith.subf %2, %9 : vector<16x128xf32>
    %11 = arith.mulf %8, %10 : vector<16x128xf32>
    %cst_5 = arith.constant dense<0.000000e+00> : vector<128xf32>
    %12 = vector.multi_reduction <add>, %11, %cst_5 [0] : vector<16x128xf32> to vector<128xf32>
    %13 = vector.shape_cast %12 : vector<128xf32> to vector<1x128xf32>
    %cst_6 = arith.constant 8.000000e+00 : f32
    %14 = vector.broadcast %cst_6 : f32 to vector<1x128xf32>
    %15 = arith.mulf %14, %6 : vector<1x128xf32>
    %16 = arith.mulf %15, %6 : vector<1x128xf32>
    %17 = arith.subf %13, %16 : vector<1x128xf32>
    %cst_7 = arith.constant 1.250000e-01 : f32
    %18 = vector.broadcast %cst_7 : f32 to vector<1x128xf32>
    %19 = arith.mulf %17, %18 : vector<1x128xf32>
    %cst_8 = arith.constant 0.000000e+00 : f32
    %20 = vector.broadcast %cst_8 : f32 to vector<1x128xf32>
    %21 = arith.maximumf %19, %20 : vector<1x128xf32>
    %cst_9 = arith.constant 9.99999974E-6 : f32
    %22 = vector.broadcast %cst_9 : f32 to vector<1x128xf32>
    %23 = arith.addf %21, %22 : vector<1x128xf32>
    %24 = math.rsqrt %23 : vector<1x128xf32>
    %c0_10 = arith.constant 0 : index
    %c0_11 = arith.constant 0 : index
    %25 = vector.load %arg3[%c0_10, %c0_11] : memref<2x128xf32, #tpu.memory_space<vmem>>, vector<1x128xf32>
    %26 = arith.mulf %25, %24 : vector<1x128xf32>
    %c1 = arith.constant 1 : index
    %c0_12 = arith.constant 0 : index
    %27 = vector.load %arg3[%c1, %c0_12] : memref<2x128xf32, #tpu.memory_space<vmem>>, vector<1x128xf32>
    %28 = arith.mulf %6, %26 : vector<1x128xf32>
    %29 = arith.subf %27, %28 : vector<1x128xf32>
    %30 = vector.broadcast %26 : vector<1x128xf32> to vector<16x128xf32>
    %31 = arith.mulf %2, %30 : vector<16x128xf32>
    %32 = vector.broadcast %29 : vector<1x128xf32> to vector<16x128xf32>
    %33 = arith.addf %31, %32 : vector<16x128xf32>
    %cst_13 = arith.constant 0.000000e+00 : f32
    %34 = vector.broadcast %cst_13 : f32 to vector<16x128xf32>
    %35 = arith.cmpf ogt, %33, %34 : vector<16x128xf32>
    %cst_14 = arith.constant 2.000000e-01 : f32
    %36 = vector.broadcast %cst_14 : f32 to vector<16x128xf32>
    %37 = arith.mulf %36, %33 : vector<16x128xf32>
    %38 = arith.select %35, %33, %37 : vector<16x128xi1>, vector<16x128xf32>
    %c0_15 = arith.constant 0 : index
    %c0_16 = arith.constant 0 : index
    %39 = vector.load %arg4[%c0_15, %c0_16] : memref<16x128xf32, #tpu.memory_space<vmem>>, vector<16x128xf32>
    tpu.vector_store %arg4[%c0_15, %c0_16], %38 {strides = array<i32>} : memref<16x128xf32, #tpu.memory_space<vmem>>, vector<16x128xf32>,
    return
  }
  func.func @transform_0(%arg0: i32) -> (i32, i32) {
    %c0_i32 = arith.constant 0 : i32
    %c0_i32_0 = arith.constant 0 : i32
    %c0_i32_1 = arith.constant 0 : i32
    return %c0_i32, %c0_i32_0 : i32, i32
  }
  func.func @transform_1(%arg0: i32) -> (i32, i32) {
    %c0_i32 = arith.constant 0 : i32
    %c0_i32_0 = arith.constant 0 : i32
    %c0_i32_1 = arith.constant 0 : i32
    return %c0_i32, %c0_i32_0 : i32, i32
  }
  func.func @transform_2(%arg0: i32) -> (i32, i32) {
    %c0_i32 = arith.constant 0 : i32
    %c0_i32_0 = arith.constant 0 : i32
    %c0_i32_1 = arith.constant 0 : i32
    return %c0_i32, %c0_i32_0 : i32, i32
  }
  func.func @transform_3(%arg0: i32) -> (i32, i32) {
    %c0_i32 = arith.constant 0 : i32
    %c0_i32_0 = arith.constant 0 : i32
    %c0_i32_1 = arith.constant 0 : i32
    return %c0_i32, %c0_i32_0 : i32, i32
  }
}

</mosaic_0001>

<bundles_post_ra>
// kernel: patch_discriminator_forward.2
= control target key start
LH: loop header
LB: loop body
LE: loop exit
PB: predicated region body
PF: predicated region fallthrough
CT: control target
= control target key end

     0   :  { %v633_v0 = vmov 0.0   ;;  %vm634_vm0 = vmmov 0   ;;  %s837_s1 = inlined_call_operand.vmem [shape: bf16[128,128], index: 1, kind: input, shape index: {}]   ;;  %s838_s0 = inlined_call_operand.vmem [shape: bf16[112,128], index: 0, kind: input, shape index: {}]   ;;  %s839_s2 = inlined_call_operand.vmem [shape: f32[2,128], index: 2, kind: input, shape index: {}]   ;;  %s840_s3 = inlined_call_operand.vmem [shape: bf16[112,128], index: 3, kind: output, shape index: {}]  }
   0x1   :  { %554 = vmatprep.subr.bf16.mxu0 %v633_v0  ;;  %v616_v1 = vld [vmem:[%s837_s1] sm:$0xff]   ;;  %598 = vmatprep.subr.bf16.mxu1 %v633_v0  ;;  %v617_v2 = vld [vmem:[%s837_s1 + $0x8] sm:$0xff]   ;;  %v618_v3 = vld [vmem:[%s837_s1 + $0x10] sm:$0xff]  }
   0x2   :  { %570 = vmatprep.mubr.msk.bf16.mxu0 %vm634_vm0, %v633_v0  ;;  %586 = vmatprep.mubr.msk.bf16.mxu1 %vm634_vm0, %v633_v0  ;;  %v619_v4 = vld [vmem:[%s837_s1 + $0x18] sm:$0xff]   ;;  %v620_v5 = vld [vmem:[%s837_s1 + $0x20] sm:$0xff]   ;;  %v621_v6 = vld [vmem:[%s837_s1 + $0x28] sm:$0xff]  }
   0x3   :  { %555 = vmatpush3.bf16.msra.mxu0 %v616_v1  ;;  %606 = vmatpush3.bf16.msra.mxu1 %v616_v1  ;;  %v622_v7 = vld [vmem:[%s837_s1 + $0x30] sm:$0xff]   ;;  %v623_v8 = vld [vmem:[%s837_s1 + $0x38] sm:$0xff]   ;;  %v624_v9 = vld [vmem:[%s838_s0] sm:$0xff]  }
   0x4   :  { %556 = vmatprep.subr.bf16.mxu0 %v633_v0  ;;  %599 = vmatprep.subr.bf16.mxu1 %v633_v0  ;;  %v627_v10 = vld [vmem:[%s838_s0 + $0x20] sm:$0xff]   ;;  %v625_v11 = vld [vmem:[%s838_s0 + $0x8] sm:$0xff]   ;;  %v626_v13 = vld [vmem:[%s838_s0 + $0x10] sm:$0xff]  }
   0x5   :  { %v629_v12 = vld [vmem:[%s838_s0 + $0x28] sm:$0xff]   ;;  %v630_v14 = vld [vmem:[%s838_s0 + $0x30] sm:$0xff]   ;;  %v628_v15 = vld [vmem:[%s838_s0 + $0x18] sm:$0xff]  }
   0x7   :  { %557 = vmatpush3.bf16.msra.mxu0 %v617_v2  ;;  %607 = vmatpush3.bf16.msra.mxu1 %v617_v2 }
   0x8   :  { %558 = vmatprep.subr.bf16.mxu0 %v633_v0  ;;  %600 = vmatprep.subr.bf16.mxu1 %v633_v0 }
   0xb   :  { %559 = vmatpush3.bf16.msra.mxu0 %v618_v3  ;;  %608 = vmatpush3.bf16.msra.mxu1 %v618_v3 }
   0xc   :  { %560 = vmatprep.subr.bf16.mxu0 %v633_v0  ;;  %601 = vmatprep.subr.bf16.mxu1 %v633_v0 }
   0xf   :  { %561 = vmatpush3.bf16.msra.mxu0 %v619_v4  ;;  %609 = vmatpush3.bf16.msra.mxu1 %v619_v4 }
  0x10   :  { %562 = vmatprep.subr.bf16.mxu0 %v633_v0  ;;  %602 = vmatprep.subr.bf16.mxu1 %v633_v0 }
  0x13   :  { %563 = vmatpush3.bf16.msra.mxu0 %v620_v5  ;;  %610 = vmatpush3.bf16.msra.mxu1 %v620_v5 }
  0x14   :  { %564 = vmatprep.subr.bf16.mxu0 %v633_v0  ;;  %603 = vmatprep.subr.bf16.mxu1 %v633_v0 }
  0x17   :  { %565 = vmatpush3.bf16.msra.mxu0 %v621_v6  ;;  %611 = vmatpush3.bf16.msra.mxu1 %v621_v6 }
  0x18   :  { %566 = vmatprep.subr.bf16.mxu0 %v633_v0  ;;  %604 = vmatprep.subr.bf16.mxu1 %v633_v0 }
  0x1b   :  { %567 = vmatpush3.bf16.msra.mxu0 %v622_v7  ;;  %612 = vmatpush3.bf16.msra.mxu1 %v622_v7 }
  0x1c   :  { %568 = vmatprep.subr.bf16.mxu0 %v633_v0  ;;  %605 = vmatprep.subr.bf16.mxu1 %v633_v0 }
  0x1f   :  { %569 = vmatpush3.bf16.msra.mxu0 %v623_v8  ;;  %613 = vmatpush3.bf16.msra.mxu1 %v623_v8 }
  0x22   :  { %571 = vmatmul.mubr.bf16.vlgmr.msra.gmra.mrb[0].mxu0 %v624_v9  ;;  %587 = vmatmul.mubr.bf16.vlgmr.msra.gmra.mrb[0].mxu1 %v627_v10 }
  0x23   :  { %574 = vmatprep.mubr.msk.bf16.mxu0 %vm634_vm0, %v633_v0  ;;  %590 = vmatprep.mubr.msk.bf16.mxu1 %vm634_vm0, %v633_v0 }
  0x2a   :  { %575 = vmatmul.mubr.bf16.gmra.mrb[4].mxu0 %v625_v11  ;;  %591 = vmatmul.mubr.bf16.gmra.mrb[4].mxu1 %v629_v12 }
  0x2b   :  { %578 = vmatprep.mubr.msk.bf16.mxu0 %vm634_vm0, %v633_v0  ;;  %594 = vmatprep.mubr.msk.bf16.mxu1 %vm634_vm0, %v633_v0 }
  0x32   :  { %579 = vmatmul.mubr.bf16.gmra.mrb[8].mxu0 %v626_v13  ;;  %595 = vmatmul.mubr.bf16.gmra.mrb[8].mxu1 %v630_v14 }
  0x33   :  { %582 = vmatprep.mubr.msk.bf16.mxu0 %vm634_vm0, %v633_v0 }
  0x3a   :  { %583 = vmatmul.mubr.bf16.gmra.mrb[12].mxu0 %v628_v15 }
  0xf5   :  { %v707_v16 = vpop.f32.mrb[0].mxu0  ;;  %v709_v17 = vpop.f32.mrb[0].mxu1 }
  0xf6   :  { %v572_v18 = vpop.f32.mrb[1].mxu0  ;;  %v588_v19 = vpop.f32.mrb[1].mxu1 }
  0xf7   :  { %v711_v20 = vpop.f32.mrb[2].mxu0  ;;  %v713_v21 = vpop.f32.mrb[2].mxu1 }
  0xf8   :  { %v224_v22 = vadd.f32 %v711_v20, %v707_v16  ;;  %v573_v23 = vpop.f32.mrb[3].mxu0  ;;  %v589_v24 = vpop.f32.mrb[3].mxu1 }
  0xfd   :  { %v717_v25 = vpop.f32.mrb[4].mxu0  ;;  %v719_v26 = vpop.f32.mrb[4].mxu1 }
  0xfe   :  { %v225_v27 = vadd.f32 %v224_v22, %v717_v25  ;;  %v576_v28 = vpop.f32.mrb[5].mxu0  ;;  %v592_v29 = vpop.f32.mrb[5].mxu1 }
  0xff   :  { %v722_v30 = vpop.f32.mrb[6].mxu0  ;;  %v724_v31 = vpop.f32.mrb[6].mxu1 }
 0x100   :  { %v226_v32 = vadd.f32 %v225_v27, %v722_v30  ;;  %v577_v33 = vpop.f32.mrb[7].mxu0  ;;  %v593_v34 = vpop.f32.mrb[7].mxu1 }
 0x105   :  { %v727_v35 = vpop.f32.mrb[8].mxu0  ;;  %v729_v36 = vpop.f32.mrb[8].mxu1 }
 0x106   :  { %v227_v37 = vadd.f32 %v226_v32, %v727_v35  ;;  %v580_v38 = vpop.f32.mrb[9].mxu0  ;;  %v596_v39 = vpop.f32.mrb[9].mxu1 }
 0x107   :  { %v732_v40 = vpop.f32.mrb[10].mxu0  ;;  %v734_v41 = vpop.f32.mrb[10].mxu1 }
 0x108   :  { %v228_v42 = vadd.f32 %v227_v37, %v732_v40  ;;  %v581_v43 = vpop.f32.mrb[11].mxu0  ;;  %v597_v44 = vpop.f32.mrb[11].mxu1 }
 0x10d   :  { %v737_v45 = vpop.f32.mrb[12].mxu0 }
 0x10e   :  { %v229_v46 = vadd.f32 %v228_v42, %v737_v45  ;;  %v584_v47 = vpop.f32.mrb[13].mxu0 }
 0x10f   :  { %v740_v48 = vpop.f32.mrb[14].mxu0 }
 0x110   :  { %v230_v49 = vadd.f32 %v229_v46, %v740_v48  ;;  %v585_v50 = vpop.f32.mrb[15].mxu0 }
 0x112   :  { %v231_v51 = vadd.f32 %v230_v49, %v709_v17 }
 0x114   :  { %v232_v52 = vadd.f32 %v231_v51, %v713_v21 }
 0x116   :  { %v233_v53 = vadd.f32 %v232_v52, %v719_v26 }
 0x118   :  { %v234_v54 = vadd.f32 %v233_v53, %v724_v31 }
 0x11a   :  { %v235_v55 = vadd.f32 %v234_v54, %v729_v36 }
 0x11c   :  { %v236_v56 = vadd.f32 %v235_v55, %v734_v41 }
 0x11e   :  { %v237_v57 = vrot.slane %v236_v56, 4 }
 0x120   :  { %v238_v58 = vadd.f32 %v237_v57, %v236_v56 }
 0x122   :  { %v239_v59 = vrot.slane %v238_v58, 2 }
 0x124   :  { %v240_v60 = vadd.f32 %v239_v59, %v238_v58 }
 0x126   :  { %v241_v61 = vrot.slane %v240_v60, 1 }
 0x128   :  { %v242_v62 = vadd.f32 %v241_v61, %v240_v60 }
 0x12a   :  { %v749_v63 = vmul.f32 0.010204081, %v242_v62 }
 0x12c   :  { %v244_v0 = vsub.f32 %v707_v16, %v749_v63  ;;  %v245_v1 = vsub.f32 %v711_v20, %v749_v63  ;;  %v246_v2 = vsub.f32 %v717_v25, %v749_v63  ;;  %v247_v3 = vsub.f32 %v722_v30, %v749_v63 }
 0x12d   :  { %v248_v4 = vsub.f32 %v727_v35, %v749_v63  ;;  %v249_v5 = vsub.f32 %v732_v40, %v749_v63  ;;  %v250_v6 = vsub.f32 %v737_v45, %v749_v63  ;;  %v251_v7 = vsub.f32 %v740_v48, %v749_v63 }
 0x12e   :  { %v252_v8 = vsub.f32 %v709_v17, %v749_v63  ;;  %v253_v9 = vsub.f32 %v713_v21, %v749_v63  ;;  %v254_v10 = vsub.f32 %v719_v26, %v749_v63  ;;  %v255_v11 = vsub.f32 %v724_v31, %v749_v63 }
 0x12f   :  { %v256_v12 = vsub.f32 %v729_v36, %v749_v63  ;;  %v257_v13 = vsub.f32 %v734_v41, %v749_v63  ;;  %v258_v14 = vmul.f32 %v244_v0, %v244_v0  ;;  %v259_v15 = vmul.f32 %v245_v1, %v245_v1 }
 0x130   :  { %v260_v18 = vmul.f32 %v246_v2, %v246_v2  ;;  %v261_v22 = vmul.f32 %v247_v3, %v247_v3  ;;  %v262_v24 = vmul.f32 %v248_v4, %v248_v4  ;;  %v263_v28 = vmul.f32 %v249_v5, %v249_v5 }
 0x131   :  { %v272_v19 = vadd.f32 %v259_v15, %v258_v14  ;;  %v264_v32 = vmul.f32 %v250_v6, %v250_v6  ;;  %v265_v34 = vmul.f32 %v251_v7, %v251_v7  ;;  %v266_v38 = vmul.f32 %v252_v8, %v252_v8  ;;  %v298_v6 = vld [vmem:[%s839_s2] sm:$0x1] }
 0x132   :  { %v267_v42 = vmul.f32 %v253_v9, %v253_v9  ;;  %v268_v44 = vmul.f32 %v254_v10, %v254_v10  ;;  %v269_v47 = vmul.f32 %v255_v11, %v255_v11  ;;  %v270_v50 = vmul.f32 %v256_v12, %v256_v12  ;;  %v300_v10 = vld [vmem:[%s839_s2 + $0x1] sm:$0x1] }
 0x133   :  { %v273_v23 = vadd.f32 %v272_v19, %v260_v18  ;;  %v271_v52 = vmul.f32 %v257_v13, %v257_v13  ;;  %v291_v59 = vmul.f32 14.0, %v749_v63  ;;  %v303_v4 = vlaneseq }
 0x135   :  { %v274_v27 = vadd.f32 %v273_v23, %v261_v22  ;;  %v292_v62 = vmul.f32 %v291_v59, %v749_v63  ;;  %v304_v5 = vshrl.u32 %v303_v4, 7 }
 0x137   :  { %v275_v29 = vadd.f32 %v274_v27, %v262_v24  ;;  %v305_v7 = vsub.s32 0, %v304_v5 }
 0x139   :  { %v276_v33 = vadd.f32 %v275_v29, %v263_v28 }
 0x13b   :  { %v277_v37 = vadd.f32 %v276_v33, %v264_v32 }
 0x13d   :  { %v278_v39 = vadd.f32 %v277_v37, %v265_v34 }
 0x13f   :  { %v279_v43 = vadd.f32 %v278_v39, %v266_v38 }
 0x141   :  { %v280_v46 = vadd.f32 %v279_v43, %v267_v42 }
 0x143   :  { %v281_v49 = vadd.f32 %v280_v46, %v268_v44 }
 0x145   :  { %v282_v51 = vadd.f32 %v281_v49, %v269_v47 }
 0x147   :  { %v283_v53 = vadd.f32 %v282_v51, %v270_v50 }
 0x149   :  { %v284_v54 = vadd.f32 %v283_v53, %v271_v52 }
 0x14b   :  { %v285_v55 = vrot.slane %v284_v54, 4 }
 0x14d   :  { %v286_v56 = vadd.f32 %v285_v55, %v284_v54 }
 0x14f   :  { %v287_v57 = vrot.slane %v286_v56, 2 }
 0x151   :  { %v288_v58 = vadd.f32 %v287_v57, %v286_v56 }
 0x153   :  { %v289_v60 = vrot.slane %v288_v58, 1 }
 0x155   :  { %v290_v61 = vadd.f32 %v289_v60, %v288_v58 }
 0x157   :  { %v293_v0 = vsub.f32 %v290_v61, %v292_v62 }
 0x159   :  { %v294_v1 = vmul.f32 0.010204081, %v293_v0 }
 0x15b   :  { %v295_v2 = vmax.f32 %v294_v1, 0.0 }
 0x15d   :  { %v296_v3 = vadd.f32 1e-05, %v295_v2 }
 0x15f   :  { %631 = vrsqrt.f32 %v296_v3 }
 0x169   :  { %v632_v8 = vpop.eup %631 }
 0x16a   :  { %v299_v9 = vmul.f32 %v632_v8, %v298_v6 }
 0x16c   :  { %v301_v11 = vmul.f32 %v299_v9, %v749_v63  ;;  %v306_v12 = vrot.slane %v299_v9, %v305_v7 }
 0x16e   :  { %v302_v13 = vsub.f32 %v300_v10, %v301_v11  ;;  %v307_v14 = vmul.f32 %v306_v12, %v707_v16  ;;  %v308_v15 = vmul.f32 %v306_v12, %v711_v20  ;;  %v309_v18 = vmul.f32 %v306_v12, %v717_v25 }
 0x16f   :  { %v310_v19 = vmul.f32 %v306_v12, %v722_v30  ;;  %v311_v22 = vmul.f32 %v306_v12, %v727_v35  ;;  %v312_v23 = vmul.f32 %v306_v12, %v732_v40  ;;  %v313_v24 = vmul.f32 %v306_v12, %v737_v45 }
 0x170   :  { %v314_v27 = vmul.f32 %v306_v12, %v740_v48  ;;  %v315_v63 = vmul.f32 %v306_v12, %v709_v17  ;;  %v316_v28 = vmul.f32 %v306_v12, %v713_v21  ;;  %v317_v16 = vmul.f32 %v306_v12, %v719_v26 }
 0x171   :  { %v318_v20 = vmul.f32 %v306_v12, %v724_v31  ;;  %v319_v25 = vmul.f32 %v306_v12, %v729_v36  ;;  %v320_v30 = vmul.f32 %v306_v12, %v734_v41  ;;  %v324_v29 = vrot.slane %v302_v13, %v305_v7 }
 0x173   :  { %v325_v35 = vadd.f32 %v324_v29, %v307_v14  ;;  %v326_v32 = vadd.f32 %v324_v29, %v308_v15  ;;  %v327_v40 = vadd.f32 %v324_v29, %v309_v18  ;;  %v328_v33 = vadd.f32 %v324_v29, %v310_v19 }
 0x174   :  { %v329_v45 = vadd.f32 %v324_v29, %v311_v22  ;;  %v330_v34 = vadd.f32 %v324_v29, %v312_v23  ;;  %v331_v48 = vadd.f32 %v324_v29, %v313_v24  ;;  %v332_v37 = vadd.f32 %v324_v29, %v314_v27 }
 0x175   :  { %v333_v17 = vadd.f32 %v324_v29, %v315_v63  ;;  %v334_v38 = vadd.f32 %v324_v29, %v316_v28  ;;  %v335_v21 = vadd.f32 %v324_v29, %v317_v16  ;;  %v336_v39 = vadd.f32 %v324_v29, %v318_v20 }
 0x176   :  { %v337_v26 = vadd.f32 %v324_v29, %v319_v25  ;;  %v338_v42 = vadd.f32 %v324_v29, %v320_v30  ;;  %vm339_vm1 = vcmp.gt.f32.partialorder %v325_v35, 0.0  ;;  %vm340_vm2 = vcmp.gt.f32.partialorder %v326_v32, 0.0 }
 0x177   :  { %vm341_vm3 = vcmp.gt.f32.partialorder %v327_v40, 0.0  ;;  %vm342_vm4 = vcmp.gt.f32.partialorder %v328_v33, 0.0  ;;  %vm343_vm5 = vcmp.gt.f32.partialorder %v329_v45, 0.0  ;;  %vm344_vm6 = vcmp.gt.f32.partialorder %v330_v34, 0.0 }
 0x178   :  { %vm345_vm7 = vcmp.gt.f32.partialorder %v331_v48, 0.0  ;;  %vm346_vm8 = vcmp.gt.f32.partialorder %v332_v37, 0.0  ;;  %vm347_vm9 = vcmp.gt.f32.partialorder %v333_v17, 0.0  ;;  %vm348_vm10 = vcmp.gt.f32.partialorder %v334_v38, 0.0 }
 0x179   :  { %vm349_vm11 = vcmp.gt.f32.partialorder %v335_v21, 0.0  ;;  %vm350_vm12 = vcmp.gt.f32.partialorder %v336_v39, 0.0  ;;  %vm351_vm13 = vcmp.gt.f32.partialorder %v337_v26, 0.0  ;;  %vm352_vm14 = vcmp.gt.f32.partialorder %v338_v42, 0.0 }
 0x17a   :  { %v353_v31 = vmul.f32 0.2, %v325_v35  ;;  %v354_v36 = vmul.f32 0.2, %v326_v32  ;;  %v355_v41 = vmul.f32 0.2, %v327_v40 }
 0x17b   :  { %v356_v43 = vmul.f32 0.2, %v328_v33  ;;  %v357_v44 = vmul.f32 0.2, %v329_v45  ;;  %v358_v46 = vmul.f32 0.2, %v330_v34 }
 0x17c   :  { %v359_v47 = vmul.f32 0.2, %v331_v48  ;;  %v360_v49 = vmul.f32 0.2, %v332_v37  ;;  %v361_v50 = vmul.f32 0.2, %v333_v17  ;;  %v367_v51 = vsel %vm339_vm1, %v325_v35, %v353_v31 }
 0x17d   :  { %v362_v52 = vmul.f32 0.2, %v334_v38  ;;  %v363_v53 = vmul.f32 0.2, %v335_v21  ;;  %v364_v54 = vmul.f32 0.2, %v336_v39  ;;  %v368_v55 = vsel %vm340_vm2, %v326_v32, %v354_v36 }
 0x17e   :  { %v365_v56 = vmul.f32 0.2, %v337_v26  ;;  %v366_v57 = vmul.f32 0.2, %v338_v42  ;;  %v369_v58 = vsel %vm341_vm3, %v327_v40, %v355_v41  ;;  %v370_v59 = vsel %vm342_vm4, %v328_v33, %v356_v43 }
 0x17f   :  { %v371_v60 = vsel %vm343_vm5, %v329_v45, %v357_v44  ;;  %v372_v61 = vsel %vm344_vm6, %v330_v34, %v358_v46  ;;  %v373_v62 = vsel %vm345_vm7, %v331_v48, %v359_v47  ;;  %v374_v0 = vsel %vm346_vm8, %v332_v37, %v360_v49 }
 0x180   :  { %v375_v1 = vsel %vm347_vm9, %v333_v17, %v361_v50  ;;  %v376_v2 = vsel %vm348_vm10, %v334_v38, %v362_v52  ;;  %v377_v3 = vsel %vm349_vm11, %v335_v21, %v363_v53  ;;  %v378_v4 = vsel %vm350_vm12, %v336_v39, %v364_v54 }
 0x181   :  { %v379_v5 = vsel %vm351_vm13, %v337_v26, %v365_v56  ;;  %v380_v6 = vsel %vm352_vm14, %v338_v42, %v366_v57  ;;  %v501_v7 = vpack.c.bf16 %v368_v55, %v367_v51  ;;  %v506_v8 = vpack.c.bf16 %v370_v59, %v369_v58 }
 0x182   :  { %v511_v9 = vpack.c.bf16 %v372_v61, %v371_v60  ;;  %v516_v10 = vpack.c.bf16 %v374_v0, %v373_v62  ;;  %v521_v11 = vpack.c.bf16 %v376_v2, %v375_v1  ;;  %v526_v12 = vpack.c.bf16 %v378_v4, %v377_v3 }
 0x183   :  { %502 = vst [vmem:[%s840_s3] sm:$0xff] %v501_v7   ;;  %533 = vst [vmem:[%s840_s3 + $0x8] sm:$0xff] %v506_v8   ;;  %v531_v13 = vpack.c.bf16 %v380_v6, %v379_v5 }
 0x184   :  { %534 = vst [vmem:[%s840_s3 + $0x10] sm:$0xff] %v511_v9   ;;  %535 = vst [vmem:[%s840_s3 + $0x18] sm:$0xff] %v516_v10  }
 0x185   :  { %536 = vst [vmem:[%s840_s3 + $0x20] sm:$0xff] %v521_v11   ;;  %537 = vst [vmem:[%s840_s3 + $0x28] sm:$0xff] %v526_v12  }
 0x186   :  { %538 = vst [vmem:[%s840_s3 + $0x30] sm:$0xff] %v531_v13  }

// kernel: patch_discriminator_forward.3
= control target key start
LH: loop header
LB: loop body
LE: loop exit
PB: predicated region body
PF: predicated region fallthrough
CT: control target
= control target key end

     0   :  { %s1268_s1 = inlined_call_operand.vmem [shape: bf16[1024,128], index: 1, kind: input, shape index: {}]   ;;  %s1269_s0 = inlined_call_operand.vmem [shape: bf16[16,1024], index: 0, kind: input, shape index: {}]   ;;  %s1270_s2 = inlined_call_operand.vmem [shape: f32[2,128], index: 2, kind: input, shape index: {}]   ;;  %s1271_s3 = inlined_call_operand.vmem [shape: f32[16,128], index: 3, kind: output, shape index: {}]  }
   0x1   :  { %v954_v0 = vld [vmem:[%s1268_s1 + $0x40] sm:$0xff]   ;;  %v958_v4 = vld [vmem:[%s1268_s1 + $0x48] sm:$0xff]   ;;  %v962_v8 = vld [vmem:[%s1268_s1 + $0x50] sm:$0xff]  }
   0x2   :  { %v955_v1 = vld [vmem:[%s1268_s1 + $0xc0] sm:$0xff]   ;;  %866 = vmatprep.subr.bf16.mxu0 %v954_v0  ;;  %v959_v5 = vld [vmem:[%s1268_s1 + $0xc8] sm:$0xff]   ;;  %v963_v9 = vld [vmem:[%s1268_s1 + $0xd0] sm:$0xff]  }
   0x3   :  { %v956_v2 = vld [vmem:[%s1268_s1] sm:$0xff]   ;;  %888 = vmatprep.subr.bf16.mxu1 %v955_v1  ;;  %v960_v6 = vld [vmem:[%s1268_s1 + $0x8] sm:$0xff]   ;;  %v964_v10 = vld [vmem:[%s1268_s1 + $0x10] sm:$0xff]  }
   0x4   :  { %v957_v3 = vld [vmem:[%s1268_s1 + $0x80] sm:$0xff]   ;;  %867 = vmatpush3.bf16.msra.mxu0 %v956_v2  ;;  %v961_v7 = vld [vmem:[%s1268_s1 + $0x88] sm:$0xff]   ;;  %v965_v11 = vld [vmem:[%s1268_s1 + $0x90] sm:$0xff]  }
   0x5   :  { %889 = vmatpush3.bf16.msra.mxu1 %v957_v3  ;;  %868 = vmatprep.subr.bf16.mxu0 %v958_v4  ;;  %v966_v12 = vld [vmem:[%s1268_s1 + $0x58] sm:$0xff]   ;;  %v970_v16 = vld [vmem:[%s1268_s1 + $0x60] sm:$0xff]   ;;  %v974_v20 = vld [vmem:[%s1268_s1 + $0x68] sm:$0xff]  }
   0x6   :  { %890 = vmatprep.subr.bf16.mxu1 %v959_v5  ;;  %v967_v13 = vld [vmem:[%s1268_s1 + $0xd8] sm:$0xff]   ;;  %v971_v17 = vld [vmem:[%s1268_s1 + $0xe0] sm:$0xff]   ;;  %v975_v21 = vld [vmem:[%s1268_s1 + $0xe8] sm:$0xff]  }
   0x7   :  { %v968_v14 = vld [vmem:[%s1268_s1 + $0x18] sm:$0xff]   ;;  %v972_v18 = vld [vmem:[%s1268_s1 + $0x20] sm:$0xff]   ;;  %v976_v22 = vld [vmem:[%s1268_s1 + $0x28] sm:$0xff]  }
   0x8   :  { %869 = vmatpush3.bf16.msra.mxu0 %v960_v6  ;;  %v969_v15 = vld [vmem:[%s1268_s1 + $0x98] sm:$0xff]   ;;  %v973_v19 = vld [vmem:[%s1268_s1 + $0xa0] sm:$0xff]   ;;  %v977_v23 = vld [vmem:[%s1268_s1 + $0xa8] sm:$0xff]  }
   0x9   :  { %891 = vmatpush3.bf16.msra.mxu1 %v961_v7  ;;  %870 = vmatprep.subr.bf16.mxu0 %v962_v8  ;;  %v978_v24 = vld [vmem:[%s1268_s1 + $0x70] sm:$0xff]   ;;  %v982_v28 = vld [vmem:[%s1268_s1 + $0x78] sm:$0xff]   ;;  %v15_v32 = vld [vmem:[%s1269_s0] sm:$0xff] }
   0xa   :  { %892 = vmatprep.subr.bf16.mxu1 %v963_v9  ;;  %v979_v25 = vld [vmem:[%s1268_s1 + $0xf0] sm:$0xff]   ;;  %v983_v29 = vld [vmem:[%s1268_s1 + $0xf8] sm:$0xff]   ;;  %v19_v33 = vld [vmem:[%s1269_s0 + $0x20] sm:$0xff] }
   0xb   :  { %v980_v26 = vld [vmem:[%s1268_s1 + $0x30] sm:$0xff]   ;;  %v984_v30 = vld [vmem:[%s1268_s1 + $0x38] sm:$0xff]   ;;  %v16_v34 = vld [vmem:[%s1269_s0 + $0x8] sm:$0xff]  ;;  %v794_v35 = vcombine.low %v15_v32, %v19_v33  ;;  %v795_v36 = vcombine.high %v15_v32, %v19_v33 }
   0xc   :  { %871 = vmatpush3.bf16.msra.mxu0 %v964_v10  ;;  %v981_v27 = vld [vmem:[%s1268_s1 + $0xb0] sm:$0xff]   ;;  %v985_v31 = vld [vmem:[%s1268_s1 + $0xb8] sm:$0xff]   ;;  %v20_v37 = vld [vmem:[%s1269_s0 + $0x28] sm:$0xff] }
   0xd   :  { %893 = vmatpush3.bf16.msra.mxu1 %v965_v11  ;;  %872 = vmatprep.subr.bf16.mxu0 %v966_v12  ;;  %v796_v38 = vcombine.low %v16_v34, %v20_v37  ;;  %v797_v39 = vcombine.high %v16_v34, %v20_v37  ;;  %v986_v40 = vld [vmem:[%s1268_s1 + $0x140] sm:$0xff]   ;;  %v990_v44 = vld [vmem:[%s1268_s1 + $0x148] sm:$0xff]   ;;  %v994_v48 = vld [vmem:[%s1268_s1 + $0x150] sm:$0xff]  }
   0xe   :  { %894 = vmatprep.subr.bf16.mxu1 %v967_v13  ;;  %607 = vmatprep.mubr.bf16.mxu0 %v795_v36  ;;  %v987_v41 = vld [vmem:[%s1268_s1 + $0x1c0] sm:$0xff]   ;;  %v991_v45 = vld [vmem:[%s1268_s1 + $0x1c8] sm:$0xff]   ;;  %v995_v49 = vld [vmem:[%s1268_s1 + $0x1d0] sm:$0xff]  }
   0xf   :  { %648 = vmatprep.mubr.bf16.mxu1 %v797_v39  ;;  %v988_v42 = vld [vmem:[%s1268_s1 + $0x100] sm:$0xff]   ;;  %v992_v46 = vld [vmem:[%s1268_s1 + $0x108] sm:$0xff]   ;;  %v996_v50 = vld [vmem:[%s1268_s1 + $0x110] sm:$0xff]  }
  0x10   :  { %873 = vmatpush3.bf16.msra.mxu0 %v968_v14  ;;  %v989_v43 = vld [vmem:[%s1268_s1 + $0x180] sm:$0xff]   ;;  %v993_v47 = vld [vmem:[%s1268_s1 + $0x188] sm:$0xff]   ;;  %v997_v51 = vld [vmem:[%s1268_s1 + $0x190] sm:$0xff]  }
  0x11   :  { %895 = vmatpush3.bf16.msra.mxu1 %v969_v15  ;;  %874 = vmatprep.subr.bf16.mxu0 %v970_v16  ;;  %v998_v52 = vld [vmem:[%s1268_s1 + $0x158] sm:$0xff]   ;;  %v1002_v56 = vld [vmem:[%s1268_s1 + $0x160] sm:$0xff]   ;;  %v1006_v60 = vld [vmem:[%s1268_s1 + $0x168] sm:$0xff]  }
  0x12   :  { %896 = vmatprep.subr.bf16.mxu1 %v971_v17  ;;  %v999_v53 = vld [vmem:[%s1268_s1 + $0x1d8] sm:$0xff]   ;;  %v1003_v57 = vld [vmem:[%s1268_s1 + $0x1e0] sm:$0xff]   ;;  %v1007_v61 = vld [vmem:[%s1268_s1 + $0x1e8] sm:$0xff]  }
  0x13   :  { %v1000_v54 = vld [vmem:[%s1268_s1 + $0x118] sm:$0xff]   ;;  %v1004_v58 = vld [vmem:[%s1268_s1 + $0x120] sm:$0xff]   ;;  %v1008_v62 = vld [vmem:[%s1268_s1 + $0x128] sm:$0xff]  }
  0x14   :  { %875 = vmatpush3.bf16.msra.mxu0 %v972_v18  ;;  %v1001_v55 = vld [vmem:[%s1268_s1 + $0x198] sm:$0xff]   ;;  %v1005_v59 = vld [vmem:[%s1268_s1 + $0x1a0] sm:$0xff]   ;;  %v1009_v63 = vld [vmem:[%s1268_s1 + $0x1a8] sm:$0xff]  }
  0x15   :  { %897 = vmatpush3.bf16.msra.mxu1 %v973_v19  ;;  %876 = vmatprep.subr.bf16.mxu0 %v974_v20  ;;  %v1010_v0 = vld [vmem:[%s1268_s1 + $0x170] sm:$0xff]   ;;  %v1014_v4 = vld [vmem:[%s1268_s1 + $0x178] sm:$0xff]  }
  0x16   :  { %898 = vmatprep.subr.bf16.mxu1 %v975_v21  ;;  %v1011_v1 = vld [vmem:[%s1268_s1 + $0x1f0] sm:$0xff]   ;;  %v1015_v5 = vld [vmem:[%s1268_s1 + $0x1f8] sm:$0xff]  }
  0x17   :  { %v1012_v2 = vld [vmem:[%s1268_s1 + $0x130] sm:$0xff]   ;;  %v1016_v6 = vld [vmem:[%s1268_s1 + $0x138] sm:$0xff]  }
  0x18   :  { %877 = vmatpush3.bf16.msra.mxu0 %v976_v22  ;;  %v1013_v3 = vld [vmem:[%s1268_s1 + $0x1b0] sm:$0xff]   ;;  %v1017_v7 = vld [vmem:[%s1268_s1 + $0x1b8] sm:$0xff]  }
  0x19   :  { %899 = vmatpush3.bf16.msra.mxu1 %v977_v23  ;;  %878 = vmatprep.subr.bf16.mxu0 %v978_v24  ;;  %v17_v8 = vld [vmem:[%s1269_s0 + $0x10] sm:$0xff]  ;;  %v18_v12 = vld [vmem:[%s1269_s0 + $0x18] sm:$0xff] }
  0x1a   :  { %900 = vmatprep.subr.bf16.mxu1 %v979_v25  ;;  %v21_v9 = vld [vmem:[%s1269_s0 + $0x30] sm:$0xff]  ;;  %v22_v13 = vld [vmem:[%s1269_s0 + $0x38] sm:$0xff] }
  0x1b   :  { %v798_v10 = vcombine.low %v17_v8, %v21_v9  ;;  %v799_v11 = vcombine.high %v17_v8, %v21_v9  ;;  %v800_v14 = vcombine.low %v18_v12, %v22_v13  ;;  %v801_v15 = vcombine.high %v18_v12, %v22_v13  ;;  %v765_v9 = vld [vmem:[%s1270_s2] sm:$0x1]  ;;  %v767_v13 = vld [vmem:[%s1270_s2 + $0x1] sm:$0x1] }
  0x1c   :  { %879 = vmatpush3.bf16.msra.mxu0 %v980_v26 }
  0x1d   :  { %901 = vmatpush3.bf16.msra.mxu1 %v981_v27  ;;  %880 = vmatprep.subr.bf16.mxu0 %v982_v28 }
  0x1e   :  { %902 = vmatprep.subr.bf16.mxu1 %v983_v29 }
  0x20   :  { %881 = vmatpush3.bf16.msra.mxu0 %v984_v30 }
  0x21   :  { %903 = vmatpush3.bf16.msra.mxu1 %v985_v31  ;;  %910 = vmatprep.subr.bf16.mxu0 %v986_v40 }
  0x22   :  { %932 = vmatprep.subr.bf16.mxu1 %v987_v41 }
  0x23   :  { %608 = vmatmul.mubr.bf16.vlgmr.msra.gmra.mrb[0].mxu0 %v794_v35 }
  0x24   :  { %649 = vmatmul.mubr.bf16.vlgmr.msra.gmra.mrb[0].mxu1 %v796_v38  ;;  %911 = vmatpush3.bf16.msra.mxu0 %v988_v42 }
  0x25   :  { %933 = vmatpush3.bf16.msra.mxu1 %v989_v43  ;;  %912 = vmatprep.subr.bf16.mxu0 %v990_v44 }
  0x26   :  { %934 = vmatprep.subr.bf16.mxu1 %v991_v45  ;;  %689 = vmatprep.mubr.bf16.mxu0 %v799_v11 }
  0x27   :  { %730 = vmatprep.mubr.bf16.mxu1 %v801_v15 }
  0x28   :  { %913 = vmatpush3.bf16.msra.mxu0 %v992_v46 }
  0x29   :  { %935 = vmatpush3.bf16.msra.mxu1 %v993_v47  ;;  %914 = vmatprep.subr.bf16.mxu0 %v994_v48 }
  0x2a   :  { %936 = vmatprep.subr.bf16.mxu1 %v995_v49 }
  0x2c   :  { %915 = vmatpush3.bf16.msra.mxu0 %v996_v50 }
  0x2d   :  { %937 = vmatpush3.bf16.msra.mxu1 %v997_v51  ;;  %916 = vmatprep.subr.bf16.mxu0 %v998_v52 }
  0x2e   :  { %938 = vmatprep.subr.bf16.mxu1 %v999_v53 }
  0x30   :  { %917 = vmatpush3.bf16.msra.mxu0 %v1000_v54 }
  0x31   :  { %939 = vmatpush3.bf16.msra.mxu1 %v1001_v55  ;;  %918 = vmatprep.subr.bf16.mxu0 %v1002_v56 }
  0x32   :  { %940 = vmatprep.subr.bf16.mxu1 %v1003_v57 }
  0x34   :  { %919 = vmatpush3.bf16.msra.mxu0 %v1004_v58 }
  0x35   :  { %941 = vmatpush3.bf16.msra.mxu1 %v1005_v59  ;;  %920 = vmatprep.subr.bf16.mxu0 %v1006_v60 }
  0x36   :  { %942 = vmatprep.subr.bf16.mxu1 %v1007_v61 }
  0x38   :  { %921 = vmatpush3.bf16.msra.mxu0 %v1008_v62 }
  0x39   :  { %943 = vmatpush3.bf16.msra.mxu1 %v1009_v63  ;;  %922 = vmatprep.subr.bf16.mxu0 %v1010_v0 }
  0x3a   :  { %944 = vmatprep.subr.bf16.mxu1 %v1011_v1 }
  0x3c   :  { %923 = vmatpush3.bf16.msra.mxu0 %v1012_v2 }
  0x3d   :  { %945 = vmatpush3.bf16.msra.mxu1 %v1013_v3  ;;  %924 = vmatprep.subr.bf16.mxu0 %v1014_v4 }
  0x3e   :  { %946 = vmatprep.subr.bf16.mxu1 %v1015_v5 }
  0x40   :  { %925 = vmatpush3.bf16.msra.mxu0 %v1016_v6 }
  0x41   :  { %947 = vmatpush3.bf16.msra.mxu1 %v1017_v7  ;;  %v770_v7 = vlaneseq }
  0x43   :  { %690 = vmatmul.mubr.bf16.vlgmr.msra.gmra.mrb[4].mxu0 %v798_v10  ;;  %v771_v8 = vshrl.u32 %v770_v7, 7 }
  0x44   :  { %731 = vmatmul.mubr.bf16.vlgmr.msra.gmra.mrb[4].mxu1 %v800_v14 }
  0x45   :  { %v772_v10 = vsub.s32 0, %v771_v8 }
  0xf6   :  { %v882_v16 = vpop.f32.mrb[0].mxu0 }
  0xf7   :  { %v904_v17 = vpop.f32.mrb[0].mxu1  ;;  %v883_v18 = vpop.f32.mrb[1].mxu0 }
  0xf8   :  { %v884_v19 = vadd.f32 %v883_v18, %v882_v16  ;;  %v905_v20 = vpop.f32.mrb[1].mxu1  ;;  %v885_v21 = vpop.f32.mrb[2].mxu0 }
  0xf9   :  { %v906_v22 = vadd.f32 %v905_v20, %v904_v17  ;;  %v907_v23 = vpop.f32.mrb[2].mxu1  ;;  %v886_v24 = vpop.f32.mrb[3].mxu0 }
  0xfa   :  { %v887_v25 = vadd.f32 %v886_v24, %v885_v21  ;;  %v908_v26 = vpop.f32.mrb[3].mxu1 }
  0xfb   :  { %v651_v27 = vadd.f32 %v906_v22, %v884_v19  ;;  %v909_v28 = vadd.f32 %v908_v26, %v907_v23 }
  0xfd   :  { %v654_v29 = vadd.f32 %v909_v28, %v887_v25 }
 0x116   :  { %v926_v30 = vpop.f32.mrb[4].mxu0 }
 0x117   :  { %v948_v31 = vpop.f32.mrb[4].mxu1  ;;  %v927_v32 = vpop.f32.mrb[5].mxu0 }
 0x118   :  { %v928_v33 = vadd.f32 %v927_v32, %v926_v30  ;;  %v949_v34 = vpop.f32.mrb[5].mxu1  ;;  %v929_v35 = vpop.f32.mrb[6].mxu0 }
 0x119   :  { %v950_v36 = vadd.f32 %v949_v34, %v948_v31  ;;  %v951_v37 = vpop.f32.mrb[6].mxu1  ;;  %v930_v38 = vpop.f32.mrb[7].mxu0 }
 0x11a   :  { %v692_v39 = vadd.f32 %v928_v33, %v651_v27  ;;  %v931_v40 = vadd.f32 %v930_v38, %v929_v35  ;;  %v952_v41 = vpop.f32.mrb[7].mxu1 }
 0x11b   :  { %v953_v42 = vadd.f32 %v952_v41, %v951_v37 }
 0x11c   :  { %v733_v43 = vadd.f32 %v950_v36, %v692_v39  ;;  %v695_v44 = vadd.f32 %v931_v40, %v654_v29 }
 0x11e   :  { %v736_v45 = vadd.f32 %v953_v42, %v695_v44 }
 0x120   :  { %v739_v46 = vadd.f32 %v736_v45, %v733_v43 }
 0x122   :  { %v740_v47 = vrot.slane %v739_v46, 4 }
 0x124   :  { %v741_v48 = vadd.f32 %v740_v47, %v739_v46 }
 0x126   :  { %v742_v49 = vrot.slane %v741_v48, 2 }
 0x128   :  { %v743_v50 = vadd.f32 %v742_v49, %v741_v48 }
 0x12a   :  { %v744_v51 = vrot.slane %v743_v50, 1 }
 0x12c   :  { %v745_v52 = vadd.f32 %v744_v51, %v743_v50 }
 0x12e   :  { %v746_v53 = vmul.f32 0.125, %v745_v52 }
 0x130   :  { %v747_v54 = vsub.f32 %v733_v43, %v746_v53  ;;  %v748_v55 = vsub.f32 %v736_v45, %v746_v53  ;;  %v758_v63 = vmul.f32 8.0, %v746_v53 }
 0x132   :  { %v749_v56 = vmul.f32 %v747_v54, %v747_v54  ;;  %v750_v57 = vmul.f32 %v748_v55, %v748_v55  ;;  %v759_v2 = vmul.f32 %v758_v63, %v746_v53 }
 0x134   :  { %v751_v58 = vadd.f32 %v750_v57, %v749_v56 }
 0x136   :  { %v752_v59 = vrot.slane %v751_v58, 4 }
 0x138   :  { %v753_v60 = vadd.f32 %v752_v59, %v751_v58 }
 0x13a   :  { %v754_v61 = vrot.slane %v753_v60, 2 }
 0x13c   :  { %v755_v62 = vadd.f32 %v754_v61, %v753_v60 }
 0x13e   :  { %v756_v0 = vrot.slane %v755_v62, 1 }
 0x140   :  { %v757_v1 = vadd.f32 %v756_v0, %v755_v62 }
 0x142   :  { %v760_v3 = vsub.f32 %v757_v1, %v759_v2 }
 0x144   :  { %v761_v4 = vmul.f32 0.125, %v760_v3 }
 0x146   :  { %v762_v5 = vmax.f32 %v761_v4, 0.0 }
 0x148   :  { %v763_v6 = vadd.f32 1e-05, %v762_v5 }
 0x14a   :  { %1018 = vrsqrt.f32 %v763_v6 }
 0x154   :  { %v1019_v11 = vpop.eup %1018 }
 0x155   :  { %v766_v12 = vmul.f32 %v1019_v11, %v765_v9 }
 0x157   :  { %v768_v14 = vmul.f32 %v766_v12, %v746_v53  ;;  %v773_v15 = vrot.slane %v766_v12, %v772_v10 }
 0x159   :  { %v769_v16 = vsub.f32 %v767_v13, %v768_v14  ;;  %v774_v17 = vmul.f32 %v773_v15, %v733_v43  ;;  %v775_v18 = vmul.f32 %v773_v15, %v736_v45 }
 0x15b   :  { %v779_v19 = vrot.slane %v769_v16, %v772_v10 }
 0x15d   :  { %v780_v20 = vadd.f32 %v779_v19, %v774_v17  ;;  %v781_v21 = vadd.f32 %v779_v19, %v775_v18 }
 0x15f   :  { %vm782_vm0 = vcmp.gt.f32.partialorder %v780_v20, 0.0  ;;  %vm783_vm1 = vcmp.gt.f32.partialorder %v781_v21, 0.0  ;;  %v784_v22 = vmul.f32 0.2, %v780_v20  ;;  %v785_v23 = vmul.f32 0.2, %v781_v21 }
 0x161   :  { %v786_v24 = vsel %vm782_vm0, %v780_v20, %v784_v22  ;;  %v787_v25 = vsel %vm783_vm1, %v781_v21, %v785_v23 }
 0x162   :  { %788 = vst [vmem:[%s1271_s3] sm:$0xff] %v786_v24  ;;  %789 = vst [vmem:[%s1271_s3 + $0x8] sm:$0xff] %v787_v25 }

</bundles_post_ra>
